<compile_context>
chip_gen: v7x
topology: tpu7x:2x2x1
jax: 0.10.0
libtpu: 0.0.40
codegen_flags: <defaults>
</compile_context>

<pallas_src>
import jax
import jax.numpy as jnp
from jax.experimental import pallas as pl
from jax.experimental.pallas import tpu as pltpu


def make_inv_pixel_shuffle(ratio: int = 2, *, max_block_bytes: int = 6 * 1024 * 1024):
    r = int(ratio)

    def inv_pixel_shuffle(x):
        B, C, H, W = x.shape
        assert H % r == 0 and W % r == 0, "spatial dims must be divisible by ratio"
        Ho, Wo = H // r, W // r
        N = B * C
        dtype = jnp.dtype(x.dtype)
        itemsize = dtype.itemsize

        is_float = jnp.issubdtype(dtype, jnp.floating)
        # TODO(synk): int32/uint32 need a non-MXU select path (the f32 MXU route is only
        # exact below 2**24); narrow ints round-trip exactly through f32.
        assert is_float or itemsize <= 2, "wide integer dtypes are not supported"
        mxu_native = dtype in (jnp.dtype(jnp.float32), jnp.dtype(jnp.bfloat16))
        mxu_dtype = dtype if mxu_native else jnp.dtype(jnp.float32)
        # TODO(synk): inf/NaN inputs can surface as NaN through the 0/1 selection matmul
        # (0 * inf == NaN); the PyTorch op would preserve them bit-exactly.

        # ---------------- tiling (all trace-time Python) ----------------
        q = {1: 32, 2: 16}.get(itemsize, 8)          # sublane quantum for this dtype
        total_bytes = N * H * W * itemsize
        tgt = max_block_bytes
        if total_bytes >= (2 << 20):                 # keep >= 2 grid steps (v7x megacore)
            tgt = min(tgt, total_bytes // 2)

        row_bytes = r * W * itemsize                 # one row of the (Ho, r*W) view
        cap_rows = max(1, tgt // row_bytes)
        tht = None                                   # output-row tile THt (TH = THt * r)
        t = q
        while t <= Ho:
            if Ho % t == 0 and t <= cap_rows:
                tht = t
            t += q
        if tht is None:                              # no aligned divisor under budget
            tht = q if Ho % q == 0 else Ho           # minimal aligned tile, or full dim
        plane_bytes = tht * row_bytes

        tn = 1                                       # channels per grid step
        if tht % q == 0:                             # (TN,THt)->(TN*THt,*) merge is free
            cand = 1
            while cand <= N:
                if N % cand == 0 and cand * plane_bytes <= tgt:
                    tn = cand
                cand += 1
        blk_bytes = tn * plane_bytes

        # W chunk for the block-diagonal column selection.  Prefer WBLK = 128*r so the
        # per-(rx) output stores are 128-lane dense; cap the contraction depth at 256.
        wblk = None
        step = 128 * r
        t = step
        while t <= min(W, 256):
            if W % t == 0:
                wblk = t
            t += step
        if wblk is None:
            t = r
            while t <= min(W, 256):
                if W % t == 0:
                    wblk = t
                t += r
        if wblk is None:
            wblk = r
        wob = wblk // r
        n_wblk = W // wblk

        # 0/1 block-diagonal selection matrix:  S[j, rx*WoB + k] = 1  iff  j == k*r + rx.
        col = jnp.arange(wblk)
        src = (col % wob) * r + (col // wob)
        sel_mat = (jnp.arange(wblk)[:, None] == src[None, :]).astype(mxu_dtype)
        s_bytes = wblk * wblk * jnp.dtype(mxu_dtype).itemsize

        needs_cast = not mxu_native
        # Every output element is 1.0 * one input element; for f32 operands force the
        # multi-pass MXU algorithm so the selection stays (near-)lossless.
        dot_kwargs = dict(preferred_element_type=jnp.float32)
        if jnp.dtype(mxu_dtype) == jnp.dtype(jnp.float32):
            dot_kwargs["precision"] = jax.lax.Precision.HIGHEST

        def kernel(s_ref, x_ref, o_ref):
            sel = s_ref[...]                                     # (WBLK, WBLK), resident
            for ry in range(r):
                for j in range(n_wblk):
                    # Contiguous lane slice == rows (.*r + ry), original cols j*WBLK..+WBLK.
                    chunk = x_ref[:, :, pl.ds(ry * W + j * wblk, wblk)]   # (TN, THt, WBLK)
                    chunk = chunk.reshape(tn * tht, wblk)
                    if needs_cast:
                        chunk = chunk.astype(jnp.float32)
                    # Lane de-interleave on the MXU (0/1 selection, f32 accumulate).
                    acc = jnp.dot(chunk, sel, **dot_kwargs)      # (TN*THt, r*WoB)
                    acc = acc.astype(o_ref.dtype)
                    for rx in range(r):
                        o_ref[:, ry * r + rx, :, pl.ds(j * wob, wob)] = (
                            acc[:, rx * wob:(rx + 1) * wob].reshape(tn, tht, wob))

        # Free, contiguous input/output reshapes.
        x2 = x.reshape(N, Ho, r * W)
        grid = (N // tn, Ho // tht)

        chunk_f32_bytes = tn * tht * wblk * 4
        vmem_limit = int(min(
            48 * 1024 * 1024,
            max(16 * 1024 * 1024,
                4 * blk_bytes + 3 * chunk_f32_bytes + 2 * s_bytes + 8 * 1024 * 1024)))
        cost = pl.CostEstimate(
            flops=2 * N * H * W * wblk,
            transcendentals=0,
            bytes_accessed=2 * N * H * W * itemsize + s_bytes)

        out4 = pl.pallas_call(
            kernel,
            out_shape=jax.ShapeDtypeStruct((N, r * r, Ho, Wo), dtype),
            grid=grid,
            in_specs=[
                pl.BlockSpec((wblk, wblk), lambda n, h: (0, 0)),        # S: fetched once
                pl.BlockSpec((tn, tht, r * W), lambda n, h: (n, h, 0)),
            ],
            out_specs=pl.BlockSpec((tn, r * r, tht, Wo), lambda n, h: (n, 0, h, 0)),
            compiler_params=pltpu.CompilerParams(
                dimension_semantics=("parallel", "parallel"),
                vmem_limit_bytes=vmem_limit),
            cost_estimate=cost,
        )(sel_mat, x2)
        return out4.reshape(B, C * r * r, Ho, Wo)

    return inv_pixel_shuffle


def inv_pixel_shuffle_reference(x, r: int = 2):
    """Pure-JAX reference of the PyTorch forward (verification only)."""
    b, ch, y, xx = x.shape
    t = x.reshape(b, ch, y // r, r, xx // r, r)
    t = jnp.transpose(t, (0, 1, 3, 5, 2, 4))
    return t.reshape(b, ch * r * r, y // r, xx // r)


if __name__ == "__main__":
    key = jax.random.PRNGKey(0)
    # Small NCHW input consistent with the module's forward.
    x = jax.random.normal(key, (2, 4, 16, 16), dtype=jnp.float32)

    fn = jax.jit(make_inv_pixel_shuffle(ratio=2))
    out = jax.block_until_ready(fn(x))

    ref = inv_pixel_shuffle_reference(x, r=2)
    assert out.shape == ref.shape == (2, 16, 8, 8), (out.shape, ref.shape)
    assert out.dtype == x.dtype
    # Pure data movement; the f32 MXU selection path is exact to <= 1 ulp (multi-pass).
    assert jnp.allclose(out, ref, rtol=1e-6, atol=1e-6), "mismatch vs reference"

    print("KERNEL_OK")
</pallas_src>

<mosaic_0001>
module attributes {stable_mosaic.version = 11 : i64} {
  func.func @kernel(%arg0: i32, %arg1: i32, %arg2: memref<16x16xf32, #tpu.memory_space<vmem>>, %arg3: memref<8x8x32xf32, #tpu.memory_space<vmem>>, %arg4: memref<8x4x8x8xf32, #tpu.memory_space<vmem>>) attributes {dimension_semantics = [#tpu.dimension_semantics<parallel>, #tpu.dimension_semantics<parallel>], iteration_bounds = array<i64: 1, 1>, scalar_prefetch = 0 : i64, scratch_operands = 0 : i64, tpu.core_type = #tpu.core_type<tc>, window_params = [{pipeline_mode = #tpu.pipeline_mode<synchronous>, transform_indices = @transform_0, window_bounds = array<i64: 16, 16>}, {transform_indices = @transform_1, window_bounds = array<i64: 8, 8, 32>}, {transform_indices = @transform_2, window_bounds = array<i64: 8, 4, 8, 8>}]} {
    %c0 = arith.constant 0 : index
    %c0_0 = arith.constant 0 : index
    %0 = vector.load %arg2[%c0, %c0_0] : memref<16x16xf32, #tpu.memory_space<vmem>>, vector<16x16xf32>
    %c0_1 = arith.constant 0 : index
    %c0_2 = arith.constant 0 : index
    %c0_3 = arith.constant 0 : index
    %1 = vector.load %arg3[%c0_1, %c0_2, %c0_3] : memref<8x8x32xf32, #tpu.memory_space<vmem>>, vector<8x8x16xf32>
    %2 = vector.shape_cast %1 : vector<8x8x16xf32> to vector<64x16xf32>
    %cst = arith.constant dense<0.000000e+00> : vector<64x16xf32>
    %3 = tpu.matmul %2, %0, %cst {dimension_numbers = #tpu.dot_dimension_numbers<[1], [0], [0], [1], [0, 0, 1, 1], [], []>, precision = #tpu.contract_precision<fp32>} : vector<64x16xf32>, vector<16x16xf32>, vector<64x16xf32> -> vector<64x16xf32>
    %4 = vector.extract_strided_slice %3 {offsets = [0, 0], sizes = [64, 8], strides = [1, 1]} : vector<64x16xf32> to vector<64x8xf32>
    %5 = vector.shape_cast %4 : vector<64x8xf32> to vector<8x8x8xf32>
    %c0_4 = arith.constant 0 : index
    %c0_5 = arith.constant 0 : index
    %c0_6 = arith.constant 0 : index
    %c0_7 = arith.constant 0 : index
    %6 = vector.load %arg4[%c0_4, %c0_5, %c0_6, %c0_7] : memref<8x4x8x8xf32, #tpu.memory_space<vmem>>, vector<8x1x8x8xf32>
    %7 = vector.shape_cast %6 : vector<8x1x8x8xf32> to vector<8x8x8xf32>
    %8 = vector.shape_cast %5 : vector<8x8x8xf32> to vector<8x1x8x8xf32>
    tpu.vector_store %arg4[%c0_4, %c0_5, %c0_6, %c0_7], %8 {strides = array<i32>} : memref<8x4x8x8xf32, #tpu.memory_space<vmem>>, vector<8x1x8x8xf32>,
    %9 = vector.extract_strided_slice %3 {offsets = [0, 8], sizes = [64, 8], strides = [1, 1]} : vector<64x16xf32> to vector<64x8xf32>
    %10 = vector.shape_cast %9 : vector<64x8xf32> to vector<8x8x8xf32>
    %c0_8 = arith.constant 0 : index
    %c1 = arith.constant 1 : index
    %c0_9 = arith.constant 0 : index
    %c0_10 = arith.constant 0 : index
    %11 = vector.load %arg4[%c0_8, %c1, %c0_9, %c0_10] : memref<8x4x8x8xf32, #tpu.memory_space<vmem>>, vector<8x1x8x8xf32>
    %12 = vector.shape_cast %11 : vector<8x1x8x8xf32> to vector<8x8x8xf32>
    %13 = vector.shape_cast %10 : vector<8x8x8xf32> to vector<8x1x8x8xf32>
    tpu.vector_store %arg4[%c0_8, %c1, %c0_9, %c0_10], %13 {strides = array<i32>} : memref<8x4x8x8xf32, #tpu.memory_space<vmem>>, vector<8x1x8x8xf32>,
    %c0_11 = arith.constant 0 : index
    %c0_12 = arith.constant 0 : index
    %c16 = arith.constant 16 : index
    %14 = vector.load %arg3[%c0_11, %c0_12, %c16] : memref<8x8x32xf32, #tpu.memory_space<vmem>>, vector<8x8x16xf32>
    %15 = vector.shape_cast %14 : vector<8x8x16xf32> to vector<64x16xf32>
    %cst_13 = arith.constant dense<0.000000e+00> : vector<64x16xf32>
    %16 = tpu.matmul %15, %0, %cst_13 {dimension_numbers = #tpu.dot_dimension_numbers<[1], [0], [0], [1], [0, 0, 1, 1], [], []>, precision = #tpu.contract_precision<fp32>} : vector<64x16xf32>, vector<16x16xf32>, vector<64x16xf32> -> vector<64x16xf32>
    %17 = vector.extract_strided_slice %16 {offsets = [0, 0], sizes = [64, 8], strides = [1, 1]} : vector<64x16xf32> to vector<64x8xf32>
    %18 = vector.shape_cast %17 : vector<64x8xf32> to vector<8x8x8xf32>
    %c0_14 = arith.constant 0 : index
    %c2 = arith.constant 2 : index
    %c0_15 = arith.constant 0 : index
    %c0_16 = arith.constant 0 : index
    %19 = vector.load %arg4[%c0_14, %c2, %c0_15, %c0_16] : memref<8x4x8x8xf32, #tpu.memory_space<vmem>>, vector<8x1x8x8xf32>
    %20 = vector.shape_cast %19 : vector<8x1x8x8xf32> to vector<8x8x8xf32>
    %21 = vector.shape_cast %18 : vector<8x8x8xf32> to vector<8x1x8x8xf32>
    tpu.vector_store %arg4[%c0_14, %c2, %c0_15, %c0_16], %21 {strides = array<i32>} : memref<8x4x8x8xf32, #tpu.memory_space<vmem>>, vector<8x1x8x8xf32>,
    %22 = vector.extract_strided_slice %16 {offsets = [0, 8], sizes = [64, 8], strides = [1, 1]} : vector<64x16xf32> to vector<64x8xf32>
    %23 = vector.shape_cast %22 : vector<64x8xf32> to vector<8x8x8xf32>
    %c0_17 = arith.constant 0 : index
    %c3 = arith.constant 3 : index
    %c0_18 = arith.constant 0 : index
    %c0_19 = arith.constant 0 : index
    %24 = vector.load %arg4[%c0_17, %c3, %c0_18, %c0_19] : memref<8x4x8x8xf32, #tpu.memory_space<vmem>>, vector<8x1x8x8xf32>
    %25 = vector.shape_cast %24 : vector<8x1x8x8xf32> to vector<8x8x8xf32>
    %26 = vector.shape_cast %23 : vector<8x8x8xf32> to vector<8x1x8x8xf32>
    tpu.vector_store %arg4[%c0_17, %c3, %c0_18, %c0_19], %26 {strides = array<i32>} : memref<8x4x8x8xf32, #tpu.memory_space<vmem>>, vector<8x1x8x8xf32>,
    return
  }
  func.func @transform_0(%arg0: i32, %arg1: i32) -> (i32, i32) {
    %c0_i32 = arith.constant 0 : i32
    %c0_i32_0 = arith.constant 0 : i32
    %c0_i32_1 = arith.constant 0 : i32
    return %c0_i32, %c0_i32_0 : i32, i32
  }
  func.func @transform_1(%arg0: i32, %arg1: i32) -> (i32, i32, i32) {
    %c0_i32 = arith.constant 0 : i32
    %c0_i32_0 = arith.constant 0 : i32
    return %arg0, %arg1, %c0_i32 : i32, i32, i32
  }
  func.func @transform_2(%arg0: i32, %arg1: i32) -> (i32, i32, i32, i32) {
    %c0_i32 = arith.constant 0 : i32
    %c0_i32_0 = arith.constant 0 : i32
    %c0_i32_1 = arith.constant 0 : i32
    return %arg0, %c0_i32, %arg1, %c0_i32_0 : i32, i32, i32, i32
  }
}

</mosaic_0001>

<bundles_post_ra>
// kernel: inv_pixel_shuffle.1
= control target key start
LH: loop header
LB: loop body
LE: loop exit
PB: predicated region body
PF: predicated region fallthrough
CT: control target
= control target key end

     0   :  { %vm21_vm0 = vcmask 130048   ;;  %s2184_s15 = smov 112   ;;  %vm806_vm1 = vcmask 64512   ;;  %s2185_s30 = smov 120   ;;  %s2637_s1 = inlined_call_operand.vmem [shape: f32[8,8,32], index: 1, kind: input, shape index: {}]   ;;  %s2638_s0 = inlined_call_operand.vmem [shape: f32[16,16], index: 0, kind: input, shape index: {}]   ;;  %s2639_s2 = inlined_call_operand.vmem [shape: f32[8,4,8,8], index: 2, kind: output, shape index: {}]  }
   0x1   :  { %v858_v0 = vld [vmem:[%s2637_s1 + $0x10] sm:$0xff]  ;;  %v856_v1 = vld [vmem:[%s2637_s1] sm:$0xff]  ;;  %v859_v2 = vld [vmem:[%s2637_s1 + $0x18] sm:$0xff] }
   0x2   :  { %876 = vrot.lane.b32.xlu1 %v858_v0, %s2184_s15  ;;  %872 = vrot.lane.b32.xlu0 %v856_v1, %s2184_s15  ;;  %v857_v3 = vld [vmem:[%s2637_s1 + $0x8] sm:$0xff]  ;;  %v23_v4 = vsel %vm21_vm0, %v856_v1, 0  ;;  %v29_v5 = vsel %vm21_vm0, %v858_v0, 0  ;;  %v32_v6 = vsel %vm21_vm0, %v859_v2, 0  ;;  %v860_v8 = vld [vmem:[%s2637_s1 + $0x20] sm:$0xff] }
   0x3   :  { %v861_v7 = vld [vmem:[%s2637_s1 + $0x28] sm:$0xff]  ;;  %v2224_v9 = vand.u32 4294901760, %v23_v4  ;;  %v26_v10 = vsel %vm21_vm0, %v857_v3, 0  ;;  %v2227_v11 = vand.u32 4294901760, %v29_v5  ;;  %v11_v12 = vld [vmem:[%s2638_s0] sm:$0xff]  ;;  %v2237_v15 = vand.u32 4294901760, %v32_v6 }
   0x4   :  { %v12_v13 = vld [vmem:[%s2638_s0 + $0x8] sm:$0xff]  ;;  %v2235_v14 = vand.u32 4294901760, %v26_v10  ;;  %v35_v16 = vsel %vm21_vm0, %v860_v8, 0  ;;  %v38_v17 = vsel %vm21_vm0, %v861_v7, 0  ;;  %v47_v18 = vand.u32 4294901760, %v11_v12  ;;  %v862_v22 = vld [vmem:[%s2637_s1 + $0x30] sm:$0xff] }
   0x5   :  { %v50_v19 = vand.u32 4294901760, %v12_v13  ;;  %v2242_v20 = vsub.f32 %v23_v4, %v2224_v9  ;;  %v2245_v21 = vsub.f32 %v29_v5, %v2227_v11  ;;  %v2256_v24 = vsub.f32 %v32_v6, %v2237_v15  ;;  %v863_v31 = vld [vmem:[%s2637_s1 + $0x38] sm:$0xff] }
   0x6   :  { %878 = vrot.lane.b32.xlu1 %v859_v2, %s2184_s15  ;;  %874 = vrot.lane.b32.xlu0 %v857_v3, %s2184_s15  ;;  %v2253_v23 = vsub.f32 %v26_v10, %v2235_v14  ;;  %v2258_v25 = vand.u32 4294901760, %v35_v16  ;;  %v2260_v26 = vand.u32 4294901760, %v38_v17  ;;  %v41_v30 = vsel %vm21_vm0, %v862_v22, 0 }
   0x7   :  { %v2262_v27 = vpack.c.bf16 %v50_v19, %v47_v18  ;;  %v115_v28 = vand.u32 4294901760, %v2242_v20  ;;  %v135_v29 = vand.u32 4294901760, %v2245_v21  ;;  %v145_v33 = vand.u32 4294901760, %v2256_v24 }
   0x8   :  { %v125_v32 = vand.u32 4294901760, %v2253_v23  ;;  %v2273_v34 = vsub.f32 %v35_v16, %v2258_v25  ;;  %v2276_v35 = vsub.f32 %v38_v17, %v2260_v26  ;;  %v2285_v38 = vand.u32 4294901760, %v41_v30 }
   0x9   :  { %2055 = vmatprep.subr.bf16.mxu0 %v2262_v27  ;;  %v116_v36 = vsub.f32 %v2242_v20, %v115_v28  ;;  %v136_v37 = vsub.f32 %v2245_v21, %v135_v29  ;;  %v44_v39 = vsel %vm21_vm0, %v863_v31, 0  ;;  %2079 = vmatprep.subr.bf16.mxu1 %v2262_v27  ;;  %v146_v41 = vsub.f32 %v2256_v24, %v145_v33 }
   0xa   :  { %882 = vrot.lane.b32.xlu1 %v861_v7, %s2184_s15  ;;  %880 = vrot.lane.b32.xlu0 %v860_v8, %s2184_s15  ;;  %v126_v40 = vsub.f32 %v2253_v23, %v125_v32  ;;  %v155_v42 = vand.u32 4294901760, %v2273_v34  ;;  %v165_v44 = vand.u32 4294901760, %v2276_v35  ;;  %v2301_v45 = vsub.f32 %v41_v30, %v2285_v38 }
   0xb   :  { %2057 = vmatpush3.bf16.msra.mxu0 %v2262_v27  ;;  %v117_v43 = vand.u32 4294901760, %v116_v36  ;;  %v2303_v46 = vand.u32 4294901760, %v44_v39  ;;  %2081 = vmatpush3.bf16.msra.mxu1 %v2262_v27  ;;  %v137_v48 = vand.u32 4294901760, %v136_v37  ;;  %v195_v52 = vsub.f32 %v11_v12, %v47_v18 }
   0xc   :  { %v127_v47 = vand.u32 4294901760, %v126_v40  ;;  %v156_v49 = vsub.f32 %v2273_v34, %v155_v42  ;;  %v175_v50 = vand.u32 4294901760, %v2301_v45  ;;  %v202_v53 = vsub.f32 %v12_v13, %v50_v19 }
   0xd   :  { %1866 = vmatprep.mubr.f32.mxu0 %v117_v43  ;;  %v2311_v51 = vsub.f32 %v44_v39, %v2303_v46  ;;  %v147_v54 = vand.u32 4294901760, %v146_v41  ;;  %v166_v55 = vsub.f32 %v2276_v35, %v165_v44  ;;  %v196_v57 = vand.u32 4294901760, %v195_v52 }
   0xe   :  { %886 = vrot.lane.b32.xlu1 %v863_v31, %s2184_s15  ;;  %884 = vrot.lane.b32.xlu0 %v862_v22, %s2184_s15  ;;  %v203_v58 = vand.u32 4294901760, %v202_v53  ;;  %v157_v59 = vand.u32 4294901760, %v156_v49  ;;  %v176_v60 = vsub.f32 %v2301_v45, %v175_v50  ;;  %v2323_v5 = vpack.c.bf16 %v202_v53, %v195_v52 }
   0xf   :  { %1867 = vmatmul.mubr.f32.vlgmr.msra.gmra.mrb[0].mxu0 %v127_v47  ;;  %v185_v56 = vand.u32 4294901760, %v2311_v51  ;;  %v197_v61 = vsub.f32 %v195_v52, %v196_v57  ;;  %v167_v63 = vand.u32 4294901760, %v166_v55 }
  0x10   :  { %1869 = vmatprep.mubr.f32.mxu0 %v137_v48  ;;  %v204_v62 = vsub.f32 %v202_v53, %v203_v58  ;;  %v177_v3 = vand.u32 4294901760, %v176_v60  ;;  %v2340_v7 = vpack.c.bf16 %v203_v58, %v196_v57 }
  0x11   :  { %v186_v0 = vsub.f32 %v2311_v51, %v185_v56  ;;  %v198_v1 = vand.u32 4294901760, %v197_v61 }
  0x12   :  { %v205_v2 = vand.u32 4294901760, %v204_v62 }
  0x13   :  { %1870 = vmatmul.mubr.f32.gmra.mrb[2].mxu0 %v147_v54  ;;  %v187_v6 = vand.u32 4294901760, %v186_v0 }
  0x14   :  { %1872 = vmatprep.mubr.f32.mxu0 %v157_v59  ;;  %v2321_v4 = vpack.c.bf16 %v205_v2, %v198_v1 }
  0x16   :  { %2059 = vmatprep.subr.bf16.mxu0 %v2321_v4  ;;  %2083 = vmatprep.subr.bf16.mxu1 %v2321_v4 }
  0x17   :  { %1873 = vmatmul.mubr.f32.gmra.mrb[4].mxu0 %v167_v63 }
  0x18   :  { %1875 = vmatprep.mubr.f32.mxu0 %v177_v3  ;;  %2061 = vmatpush3.bf16.msra.mxu0 %v2321_v4 }
  0x19   :  { %2063 = vmatprep.subr.bf16.mxu0 %v2323_v5 }
  0x1b   :  { %1876 = vmatmul.mubr.f32.gmra.mrb[6].mxu0 %v187_v6 }
  0x1c   :  { %1882 = vmatprep.mubr.f32.mxu0 %v2224_v9 }
  0x1f   :  { %1883 = vmatmul.mubr.f32.vlgmr.msra.gmra.mrb[0].mxu0 %v2235_v14 }
  0x20   :  { %1885 = vmatprep.mubr.f32.mxu0 %v2227_v11  ;;  %2065 = vmatpush3.bf16.msra.mxu0 %v2323_v5 }
  0x21   :  { %2067 = vmatprep.subr.bf16.mxu0 %v2262_v27 }
  0x23   :  { %1886 = vmatmul.mubr.f32.gmra.mrb[2].mxu0 %v2237_v15 }
  0x24   :  { %1888 = vmatprep.mubr.f32.mxu0 %v2258_v25 }
  0x27   :  { %1889 = vmatmul.mubr.f32.gmra.mrb[4].mxu0 %v2260_v26 }
  0x28   :  { %1891 = vmatprep.mubr.f32.mxu0 %v2285_v38 }
  0x2b   :  { %1892 = vmatmul.mubr.f32.gmra.mrb[6].mxu0 %v2303_v46 }
  0x2c   :  { %1898 = vmatprep.mubr.f32.mxu0 %v2242_v20 }
  0x2f   :  { %1899 = vmatmul.mubr.f32.vlgmr.msra.gmra.mrb[0].mxu0 %v2253_v23 }
  0x30   :  { %1901 = vmatprep.mubr.f32.mxu0 %v2245_v21  ;;  %2069 = vmatpush3.bf16.msra.mxu0 %v2262_v27 }
  0x31   :  { %2071 = vmatprep.subr.bf16.mxu0 %v2340_v7 }
  0x33   :  { %1902 = vmatmul.mubr.f32.gmra.mrb[2].mxu0 %v2256_v24 }
  0x34   :  { %1904 = vmatprep.mubr.f32.mxu0 %v2273_v34 }
  0x37   :  { %1905 = vmatmul.mubr.f32.gmra.mrb[4].mxu0 %v2276_v35 }
  0x38   :  { %1907 = vmatprep.mubr.f32.mxu0 %v2301_v45 }
  0x3b   :  { %1908 = vmatmul.mubr.f32.gmra.mrb[6].mxu0 %v2311_v51 }
  0x3c   :  { %1914 = vmatprep.mubr.f32.mxu0 %v115_v28 }
  0x3f   :  { %1915 = vmatmul.mubr.f32.vlgmr.msra.gmra.mrb[0].mxu0 %v125_v32 }
  0x40   :  { %1917 = vmatprep.mubr.f32.mxu0 %v135_v29  ;;  %2073 = vmatpush3.bf16.msra.mxu0 %v2340_v7 }
  0x41   :  { %2075 = vmatprep.subr.bf16.mxu0 %v2262_v27 }
  0x43   :  { %1918 = vmatmul.mubr.f32.gmra.mrb[2].mxu0 %v145_v33 }
  0x44   :  { %1920 = vmatprep.mubr.f32.mxu0 %v155_v42 }
  0x47   :  { %1921 = vmatmul.mubr.f32.gmra.mrb[4].mxu0 %v165_v44 }
  0x48   :  { %1923 = vmatprep.mubr.f32.mxu0 %v175_v50 }
  0x4b   :  { %1924 = vmatmul.mubr.f32.gmra.mrb[6].mxu0 %v185_v56 }
  0x4c   :  { %1930 = vmatprep.mubr.f32.mxu0 %v2224_v9 }
  0x4f   :  { %1931 = vmatmul.mubr.f32.vlgmr.msra.gmra.mrb[0].mxu0 %v2235_v14 }
  0x50   :  { %1933 = vmatprep.mubr.f32.mxu0 %v2227_v11  ;;  %2077 = vmatpush3.bf16.msra.mxu0 %v2262_v27 }
  0x53   :  { %1934 = vmatmul.mubr.f32.gmra.mrb[2].mxu0 %v2237_v15 }
  0x54   :  { %1936 = vmatprep.mubr.f32.mxu0 %v2258_v25 }
  0x57   :  { %1937 = vmatmul.mubr.f32.gmra.mrb[4].mxu0 %v2260_v26 }
  0x58   :  { %1939 = vmatprep.mubr.f32.mxu0 %v2285_v38 }
  0x5b   :  { %1940 = vmatmul.mubr.f32.gmra.mrb[6].mxu0 %v2303_v46 }
  0x5c   :  { %1946 = vmatprep.mubr.f32.mxu0 %v2224_v9 }
  0x5f   :  { %1947 = vmatmul.mubr.f32.vlgmr.msra.gmra.mrb[0].mxu0 %v2235_v14 }
  0x60   :  { %1949 = vmatprep.mubr.f32.mxu0 %v2227_v11 }
  0x63   :  { %1950 = vmatmul.mubr.f32.gmra.mrb[2].mxu0 %v2237_v15 }
  0x64   :  { %1952 = vmatprep.mubr.f32.mxu0 %v2258_v25 }
  0x67   :  { %1953 = vmatmul.mubr.f32.gmra.mrb[4].mxu0 %v2260_v26 }
  0x68   :  { %1955 = vmatprep.mubr.f32.mxu0 %v2285_v38 }
  0x6b   :  { %1956 = vmatmul.mubr.f32.gmra.mrb[6].mxu0 %v2303_v46 }
  0x74   :  { %v877_v8 = vpop.permute.xlu1 %876  ;;  %v873_v10 = vpop.permute.xlu0 %872 }
  0x75   :  { %v892_v12 = vsel %vm21_vm0, %v877_v8, 0  ;;  %v888_v9 = vsel %vm21_vm0, %v873_v10, 0 }
  0x76   :  { %v2384_v13 = vand.u32 4294901760, %v892_v12  ;;  %v2386_v14 = vand.u32 4294901760, %v888_v9 }
  0x78   :  { %v2389_v11 = vsub.f32 %v892_v12, %v2384_v13  ;;  %v2392_v15 = vsub.f32 %v888_v9, %v2386_v14  ;;  %v879_v16 = vpop.permute.xlu1 %878  ;;  %v875_v17 = vpop.permute.xlu0 %874 }
  0x79   :  { %v894_v18 = vsel %vm21_vm0, %v879_v16, 0  ;;  %v890_v19 = vsel %vm21_vm0, %v875_v17, 0 }
  0x7a   :  { %v2396_v20 = vand.u32 4294901760, %v894_v18  ;;  %v2398_v21 = vand.u32 4294901760, %v890_v19  ;;  %v973_v22 = vand.u32 4294901760, %v2392_v15  ;;  %v993_v23 = vand.u32 4294901760, %v2389_v11 }
  0x7c   :  { %v2403_v24 = vsub.f32 %v894_v18, %v2396_v20  ;;  %v2406_v25 = vsub.f32 %v890_v19, %v2398_v21  ;;  %v883_v26 = vpop.permute.xlu1 %882  ;;  %v881_v28 = vpop.permute.xlu0 %880  ;;  %v974_v29 = vsub.f32 %v2392_v15, %v973_v22  ;;  %v994_v42 = vsub.f32 %v2389_v11, %v993_v23 }
  0x7d   :  { %v898_v30 = vsel %vm21_vm0, %v883_v26, 0  ;;  %v896_v31 = vsel %vm21_vm0, %v881_v28, 0 }
  0x7e   :  { %v983_v32 = vand.u32 4294901760, %v2406_v25  ;;  %v2414_v33 = vand.u32 4294901760, %v898_v30  ;;  %v2416_v34 = vand.u32 4294901760, %v896_v31  ;;  %v1003_v35 = vand.u32 4294901760, %v2403_v24 }
  0x7f   :  { %v975_v36 = vand.u32 4294901760, %v974_v29  ;;  %v995_v53 = vand.u32 4294901760, %v994_v42 }
  0x80   :  { %v2420_v37 = vsub.f32 %v898_v30, %v2414_v33  ;;  %v2423_v38 = vsub.f32 %v896_v31, %v2416_v34  ;;  %v887_v39 = vpop.permute.xlu1 %886  ;;  %v885_v40 = vpop.permute.xlu0 %884  ;;  %v984_v41 = vsub.f32 %v2406_v25, %v983_v32  ;;  %v1004_v50 = vsub.f32 %v2403_v24, %v1003_v35 }
  0x81   :  { %v902_v43 = vsel %vm21_vm0, %v887_v39, 0  ;;  %1962 = vmatprep.mubr.f32.mxu1 %v975_v36  ;;  %v900_v44 = vsel %vm21_vm0, %v885_v40, 0 }
  0x82   :  { %v1013_v45 = vand.u32 4294901760, %v2423_v38  ;;  %v2434_v46 = vand.u32 4294901760, %v902_v43  ;;  %v2436_v47 = vand.u32 4294901760, %v900_v44  ;;  %v1023_v48 = vand.u32 4294901760, %v2420_v37 }
  0x83   :  { %v985_v49 = vand.u32 4294901760, %v984_v41  ;;  %v1005_v58 = vand.u32 4294901760, %v1004_v50 }
  0x84   :  { %v1042_v51 = vsub.f32 %v902_v43, %v2434_v46  ;;  %v1032_v52 = vsub.f32 %v900_v44, %v2436_v47  ;;  %v1014_v54 = vsub.f32 %v2423_v38, %v1013_v45  ;;  %v1024_v59 = vsub.f32 %v2420_v37, %v1023_v48 }
  0x85   :  { %1963 = vmatmul.mubr.f32.vlgmr.msra.gmra.mrb[0].mxu1 %v985_v49 }
  0x86   :  { %v1033_v55 = vand.u32 4294901760, %v1032_v52  ;;  %2085 = vmatpush3.bf16.msra.mxu1 %v2321_v4  ;;  %1965 = vmatprep.mubr.f32.mxu1 %v995_v53  ;;  %v1015_v56 = vand.u32 4294901760, %v1014_v54  ;;  %v1043_v57 = vand.u32 4294901760, %v1042_v51  ;;  %v1025_v62 = vand.u32 4294901760, %v1024_v59 }
  0x87   :  { %2087 = vmatprep.subr.bf16.mxu1 %v2323_v5 }
  0x88   :  { %v1034_v60 = vsub.f32 %v1032_v52, %v1033_v55  ;;  %v1044_v63 = vsub.f32 %v1042_v51, %v1043_v57 }
  0x89   :  { %1966 = vmatmul.mubr.f32.gmra.mrb[2].mxu1 %v1005_v58 }
  0x8a   :  { %1968 = vmatprep.mubr.f32.mxu1 %v1015_v56  ;;  %v1035_v61 = vand.u32 4294901760, %v1034_v60  ;;  %v1045_v0 = vand.u32 4294901760, %v1044_v63 }
  0x8d   :  { %1969 = vmatmul.mubr.f32.gmra.mrb[4].mxu1 %v1025_v62 }
  0x8e   :  { %1971 = vmatprep.mubr.f32.mxu1 %v1035_v61 }
  0x91   :  { %1972 = vmatmul.mubr.f32.gmra.mrb[6].mxu1 %v1045_v0 }
  0x92   :  { %1978 = vmatprep.mubr.f32.mxu1 %v2386_v14 }
  0x95   :  { %1979 = vmatmul.mubr.f32.vlgmr.msra.gmra.mrb[0].mxu1 %v2398_v21 }
  0x96   :  { %2089 = vmatpush3.bf16.msra.mxu1 %v2323_v5  ;;  %1981 = vmatprep.mubr.f32.mxu1 %v2384_v13 }
  0x97   :  { %2091 = vmatprep.subr.bf16.mxu1 %v2262_v27 }
  0x99   :  { %1982 = vmatmul.mubr.f32.gmra.mrb[2].mxu1 %v2396_v20 }
  0x9a   :  { %1984 = vmatprep.mubr.f32.mxu1 %v2416_v34 }
  0x9d   :  { %1985 = vmatmul.mubr.f32.gmra.mrb[4].mxu1 %v2414_v33 }
  0x9e   :  { %1987 = vmatprep.mubr.f32.mxu1 %v2436_v47 }
  0xa1   :  { %1988 = vmatmul.mubr.f32.gmra.mrb[6].mxu1 %v2434_v46 }
  0xa2   :  { %1994 = vmatprep.mubr.f32.mxu1 %v2392_v15 }
  0xa5   :  { %1995 = vmatmul.mubr.f32.vlgmr.msra.gmra.mrb[0].mxu1 %v2406_v25 }
  0xa6   :  { %2093 = vmatpush3.bf16.msra.mxu1 %v2262_v27  ;;  %1997 = vmatprep.mubr.f32.mxu1 %v2389_v11 }
  0xa7   :  { %2095 = vmatprep.subr.bf16.mxu1 %v2340_v7 }
  0xa9   :  { %1998 = vmatmul.mubr.f32.gmra.mrb[2].mxu1 %v2403_v24 }
  0xaa   :  { %2000 = vmatprep.mubr.f32.mxu1 %v2423_v38 }
  0xad   :  { %2001 = vmatmul.mubr.f32.gmra.mrb[4].mxu1 %v2420_v37 }
  0xae   :  { %2003 = vmatprep.mubr.f32.mxu1 %v1032_v52 }
  0xb1   :  { %2004 = vmatmul.mubr.f32.gmra.mrb[6].mxu1 %v1042_v51 }
  0xb2   :  { %2010 = vmatprep.mubr.f32.mxu1 %v973_v22 }
  0xb5   :  { %2011 = vmatmul.mubr.f32.vlgmr.msra.gmra.mrb[0].mxu1 %v983_v32 }
  0xb6   :  { %2097 = vmatpush3.bf16.msra.mxu1 %v2340_v7  ;;  %2013 = vmatprep.mubr.f32.mxu1 %v993_v23 }
  0xb7   :  { %2099 = vmatprep.subr.bf16.mxu1 %v2262_v27 }
  0xb9   :  { %2014 = vmatmul.mubr.f32.gmra.mrb[2].mxu1 %v1003_v35 }
  0xba   :  { %2016 = vmatprep.mubr.f32.mxu1 %v1013_v45 }
  0xbd   :  { %2017 = vmatmul.mubr.f32.gmra.mrb[4].mxu1 %v1023_v48 }
  0xbe   :  { %2019 = vmatprep.mubr.f32.mxu1 %v1033_v55 }
  0xc1   :  { %2020 = vmatmul.mubr.f32.gmra.mrb[6].mxu1 %v1043_v57 }
  0xc2   :  { %2026 = vmatprep.mubr.f32.mxu1 %v2386_v14 }
  0xc5   :  { %2027 = vmatmul.mubr.f32.vlgmr.msra.gmra.mrb[0].mxu1 %v2398_v21 }
  0xc6   :  { %2101 = vmatpush3.bf16.msra.mxu1 %v2262_v27  ;;  %2029 = vmatprep.mubr.f32.mxu1 %v2384_v13 }
  0xc9   :  { %2030 = vmatmul.mubr.f32.gmra.mrb[2].mxu1 %v2396_v20 }
  0xca   :  { %2032 = vmatprep.mubr.f32.mxu1 %v2416_v34 }
  0xcd   :  { %2033 = vmatmul.mubr.f32.gmra.mrb[4].mxu1 %v2414_v33 }
  0xce   :  { %2035 = vmatprep.mubr.f32.mxu1 %v2436_v47 }
  0xd1   :  { %2036 = vmatmul.mubr.f32.gmra.mrb[6].mxu1 %v2434_v46 }
  0xd2   :  { %2042 = vmatprep.mubr.f32.mxu1 %v2386_v14 }
  0xd5   :  { %2043 = vmatmul.mubr.f32.vlgmr.msra.gmra.mrb[0].mxu1 %v2398_v21 }
  0xd6   :  { %2045 = vmatprep.mubr.f32.mxu1 %v2384_v13 }
  0xd9   :  { %2046 = vmatmul.mubr.f32.gmra.mrb[2].mxu1 %v2396_v20 }
  0xda   :  { %2048 = vmatprep.mubr.f32.mxu1 %v2416_v34 }
  0xdd   :  { %2049 = vmatmul.mubr.f32.gmra.mrb[4].mxu1 %v2414_v33 }
  0xde   :  { %2051 = vmatprep.mubr.f32.mxu1 %v2436_v47 }
  0xe1   :  { %2052 = vmatmul.mubr.f32.gmra.mrb[6].mxu1 %v2434_v46 }
 0x132   :  { %v1948_v27 = vpop.f32.mrb[0].mxu0 }
 0x133   :  { %808 = vst.msk [vmem:[%s2639_s2 + $0x20] sm:$0xff] %vm806_vm1, %v1948_v27  ;;  %v760_v1 = vpop.f32.mrb[1].mxu0  ;;  %825 = vrot.lane.b32.xlu1 %v1948_v27, %s2185_s30 }
 0x134   :  { %807 = vst.msk [vmem:[%s2639_s2] sm:$0xff] %vm806_vm1, %v760_v1  ;;  %823 = vrot.lane.b32.xlu0 %v760_v1, %s2185_s30 }
 0x136   :  { %v1951_v2 = vpop.f32.mrb[2].mxu0 }
 0x137   :  { %810 = vst.msk [vmem:[%s2639_s2 + $0x60] sm:$0xff] %vm806_vm1, %v1951_v2  ;;  %v772_v3 = vpop.f32.mrb[3].mxu0  ;;  %829 = vrot.lane.b32.xlu1 %v1951_v2, %s2185_s30 }
 0x138   :  { %809 = vst.msk [vmem:[%s2639_s2 + $0x40] sm:$0xff] %vm806_vm1, %v772_v3  ;;  %827 = vrot.lane.b32.xlu0 %v772_v3, %s2185_s30 }
 0x13a   :  { %v1954_v4 = vpop.f32.mrb[4].mxu0 }
 0x13b   :  { %812 = vst.msk [vmem:[%s2639_s2 + $0xa0] sm:$0xff] %vm806_vm1, %v1954_v4  ;;  %v784_v5 = vpop.f32.mrb[5].mxu0  ;;  %833 = vrot.lane.b32.xlu1 %v1954_v4, %s2185_s30 }
 0x13c   :  { %811 = vst.msk [vmem:[%s2639_s2 + $0x80] sm:$0xff] %vm806_vm1, %v784_v5  ;;  %831 = vrot.lane.b32.xlu0 %v784_v5, %s2185_s30 }
 0x13e   :  { %v1957_v6 = vpop.f32.mrb[6].mxu0 }
 0x13f   :  { %814 = vst.msk [vmem:[%s2639_s2 + $0xe0] sm:$0xff] %vm806_vm1, %v1957_v6  ;;  %v796_v7 = vpop.f32.mrb[7].mxu0  ;;  %837 = vrot.lane.b32.xlu1 %v1957_v6, %s2185_s30 }
 0x140   :  { %813 = vst.msk [vmem:[%s2639_s2 + $0xc0] sm:$0xff] %vm806_vm1, %v796_v7  ;;  %835 = vrot.lane.b32.xlu0 %v796_v7, %s2185_s30 }
 0x1a5   :  { %v826_v8 = vpop.permute.xlu1 %825 }
 0x1a6   :  { %1719 = vst.msk [vmem:[%s2639_s2 + $0x28] sm:$0xff] %vm806_vm1, %v826_v8  ;;  %v824_v10 = vpop.permute.xlu0 %823 }
 0x1a7   :  { %1718 = vst.msk [vmem:[%s2639_s2 + $0x8] sm:$0xff] %vm806_vm1, %v824_v10 }
 0x1a8   :  { %v2044_v12 = vpop.f32.mrb[0].mxu1 }
 0x1a9   :  { %1727 = vst.msk [vmem:[%s2639_s2 + $0x30] sm:$0xff] %vm806_vm1, %v2044_v12  ;;  %v1618_v9 = vpop.f32.mrb[1].mxu1  ;;  %1683 = vrot.lane.b32.xlu1 %v2044_v12, %s2185_s30  ;;  %v830_v13 = vpop.permute.xlu1 %829 }
 0x1aa   :  { %1726 = vst.msk [vmem:[%s2639_s2 + $0x10] sm:$0xff] %vm806_vm1, %v1618_v9  ;;  %1681 = vrot.lane.b32.xlu0 %v1618_v9, %s2185_s30  ;;  %1721 = vst.msk [vmem:[%s2639_s2 + $0x68] sm:$0xff] %vm806_vm1, %v830_v13  ;;  %v828_v14 = vpop.permute.xlu0 %827 }
 0x1ab   :  { %1720 = vst.msk [vmem:[%s2639_s2 + $0x48] sm:$0xff] %vm806_vm1, %v828_v14 }
 0x1ac   :  { %v2047_v11 = vpop.f32.mrb[2].mxu1 }
 0x1ad   :  { %1729 = vst.msk [vmem:[%s2639_s2 + $0x70] sm:$0xff] %vm806_vm1, %v2047_v11  ;;  %v1630_v15 = vpop.f32.mrb[3].mxu1  ;;  %1687 = vrot.lane.b32.xlu1 %v2047_v11, %s2185_s30  ;;  %v834_v16 = vpop.permute.xlu1 %833 }
 0x1ae   :  { %1728 = vst.msk [vmem:[%s2639_s2 + $0x50] sm:$0xff] %vm806_vm1, %v1630_v15  ;;  %1685 = vrot.lane.b32.xlu0 %v1630_v15, %s2185_s30  ;;  %1723 = vst.msk [vmem:[%s2639_s2 + $0xa8] sm:$0xff] %vm806_vm1, %v834_v16  ;;  %v832_v17 = vpop.permute.xlu0 %831 }
 0x1af   :  { %1722 = vst.msk [vmem:[%s2639_s2 + $0x88] sm:$0xff] %vm806_vm1, %v832_v17 }
 0x1b0   :  { %v2050_v18 = vpop.f32.mrb[4].mxu1 }
 0x1b1   :  { %1731 = vst.msk [vmem:[%s2639_s2 + $0xb0] sm:$0xff] %vm806_vm1, %v2050_v18  ;;  %v1642_v19 = vpop.f32.mrb[5].mxu1  ;;  %1691 = vrot.lane.b32.xlu1 %v2050_v18, %s2185_s30  ;;  %v838_v20 = vpop.permute.xlu1 %837 }
 0x1b2   :  { %1730 = vst.msk [vmem:[%s2639_s2 + $0x90] sm:$0xff] %vm806_vm1, %v1642_v19  ;;  %1689 = vrot.lane.b32.xlu0 %v1642_v19, %s2185_s30  ;;  %1725 = vst.msk [vmem:[%s2639_s2 + $0xe8] sm:$0xff] %vm806_vm1, %v838_v20  ;;  %v836_v21 = vpop.permute.xlu0 %835 }
 0x1b3   :  { %1724 = vst.msk [vmem:[%s2639_s2 + $0xc8] sm:$0xff] %vm806_vm1, %v836_v21 }
 0x1b4   :  { %v2053_v22 = vpop.f32.mrb[6].mxu1 }
 0x1b5   :  { %1733 = vst.msk [vmem:[%s2639_s2 + $0xf0] sm:$0xff] %vm806_vm1, %v2053_v22  ;;  %v1654_v23 = vpop.f32.mrb[7].mxu1  ;;  %1695 = vrot.lane.b32.xlu1 %v2053_v22, %s2185_s30 }
 0x1b6   :  { %1732 = vst.msk [vmem:[%s2639_s2 + $0xd0] sm:$0xff] %vm806_vm1, %v1654_v23  ;;  %1693 = vrot.lane.b32.xlu0 %v1654_v23, %s2185_s30 }
 0x21b   :  { %v1684_v24 = vpop.permute.xlu1 %1683 }
 0x21c   :  { %1735 = vst.msk [vmem:[%s2639_s2 + $0x38] sm:$0xff] %vm806_vm1, %v1684_v24  ;;  %v1682_v25 = vpop.permute.xlu0 %1681 }
 0x21d   :  { %1734 = vst.msk [vmem:[%s2639_s2 + $0x18] sm:$0xff] %vm806_vm1, %v1682_v25 }
 0x21f   :  { %v1688_v26 = vpop.permute.xlu1 %1687 }
 0x220   :  { %1737 = vst.msk [vmem:[%s2639_s2 + $0x78] sm:$0xff] %vm806_vm1, %v1688_v26  ;;  %v1686_v28 = vpop.permute.xlu0 %1685 }
 0x221   :  { %1736 = vst.msk [vmem:[%s2639_s2 + $0x58] sm:$0xff] %vm806_vm1, %v1686_v28 }
 0x223   :  { %v1692_v29 = vpop.permute.xlu1 %1691 }
 0x224   :  { %1739 = vst.msk [vmem:[%s2639_s2 + $0xb8] sm:$0xff] %vm806_vm1, %v1692_v29  ;;  %v1690_v30 = vpop.permute.xlu0 %1689 }
 0x225   :  { %1738 = vst.msk [vmem:[%s2639_s2 + $0x98] sm:$0xff] %vm806_vm1, %v1690_v30 }
 0x227   :  { %v1696_v31 = vpop.permute.xlu1 %1695 }
 0x228   :  { %1741 = vst.msk [vmem:[%s2639_s2 + $0xf8] sm:$0xff] %vm806_vm1, %v1696_v31  ;;  %v1694_v32 = vpop.permute.xlu0 %1693 }
 0x229   :  { %1740 = vst.msk [vmem:[%s2639_s2 + $0xd8] sm:$0xff] %vm806_vm1, %v1694_v32 }

</bundles_post_ra>
